<compile_context>
chip_gen: v6e
topology: v6e:2x2x1
jax: 0.10.0
libtpu: 0.0.40
codegen_flags: <defaults>
</compile_context>

<pallas_src>
import functools

import jax
import jax.numpy as jnp
from jax.experimental import pallas as pl
from jax.experimental.pallas import tpu as pltpu


# ----------------------------------------------------------------------------- kernel
def _pinn_kernel(xT_ref, pf_ref, pb_ref, o_ref, *, act_dtype):
    f32 = jnp.float32

    x = xT_ref[...].astype(act_dtype)                      # (2, tb), lane-dense
    pf = pf_ref[...]                                       # (20, 7) in act_dtype
    w1c0 = pf[:, 0:1]                                      # (20, 1)
    w1c1 = pf[:, 1:2]
    b1 = pf[:, 2:3]
    b2 = pf[:, 3:4]
    b3 = pf[:, 4:5]
    w4 = pf[:, 5:6]
    b4 = pf[0:1, 6:7]                                      # (1, 1)

    # fc1 (in=2): contraction dim is only 2 -> two VPU broadcast FMAs, tanh on EUP.
    h = jnp.tanh(w1c0 * x[0:1, :] + w1c1 * x[1:2, :] + b1)             # (20, tb)

    mxu_dtype = pb_ref.dtype
    # fc2 / fc3: 20x20 matmuls on the MXU, f32 accumulation; cast once BEFORE tanh
    # so bias-add + tanh run in act_dtype (bf16 on v6e/v7x -> half the EUP pushes).
    z = jnp.dot(pb_ref[0], h.astype(mxu_dtype), preferred_element_type=f32)
    h = jnp.tanh(z.astype(act_dtype) + b2)                              # (20, tb)
    z = jnp.dot(pb_ref[1], h.astype(mxu_dtype), preferred_element_type=f32)
    h = jnp.tanh(z.astype(act_dtype) + b3)                              # (20, tb)

    # fc4 (20 -> 1): VPU mul + XLU sublane reduce, accumulated in f32.
    y = jnp.sum((w4 * h).astype(f32), axis=0, keepdims=True) + b4.astype(f32)
    o_ref[...] = y.astype(o_ref.dtype)                                  # (1, tb)


# ----------------------------------------------------------------------------- helpers
def _bf16_vector_ok():
    """True if the chip has bf16 VALU/EUP (v6e, v7x).  v2-v5 chips do not."""
    try:
        kind = jax.devices()[0].device_kind.lower()
    except Exception:
        return True
    for tag in ("v2", "v3", "v4", "v5"):
        if tag in kind:
            return False
    return True


def _choose_tile(n, block_rows):
    """Lane-aligned row tile.  Keep >=4 grid blocks when possible so v7x's two
    TensorCores both get work; single full-extent block for small batches."""
    if n <= block_rows:
        return n                              # block == full dim is always legal
    tb = block_rows
    while tb > 512 and tb % 256 == 0 and pl.cdiv(n, tb) < 4:
        tb //= 2
    return tb


def _pack_params(params, act_dtype, mxu_dtype):
    """Pack the 8 PyTorch-layout tensors into two small slabs.

    pf (20, 7) act_dtype : [w1[:,0], w1[:,1], b1, b2, b3, w4, b4(broadcast)]
    pb (2, 20, 20) mxu   : [w2, w3]
    """
    w1 = params["w1"]                                     # (20, 2)
    pf = jnp.stack(
        [w1[:, 0], w1[:, 1],
         params["b1"].reshape(20), params["b2"].reshape(20), params["b3"].reshape(20),
         params["w4"].reshape(20),
         jnp.broadcast_to(params["b4"].reshape(()), (20,))],
        axis=1).astype(act_dtype)                          # (20, 7)
    pb = jnp.stack([params["w2"], params["w3"]], axis=0).astype(mxu_dtype)  # (2,20,20)
    return pf, pb


# ----------------------------------------------------------------------------- wrappers
@functools.partial(jax.jit, static_argnames=("block_rows", "precision"))
def _pinn_forward_t_impl(xT, params, *, block_rows, precision):
    """xT: (2, N) feature-major input."""
    assert xT.shape[0] == 2
    assert block_rows % 128 == 0 and block_rows >= 128
    n = xT.shape[1]
    if n == 0:
        return jnp.zeros((1, 0), xT.dtype)

    if precision == "f32":          # all-f32 (reference-accurate)
        act_dtype, mxu_dtype = jnp.float32, jnp.float32
    elif precision == "mixed":      # f32 VPU/EUP, bf16 MXU inputs (v5e default)
        act_dtype, mxu_dtype = jnp.float32, jnp.bfloat16
    elif precision == "bf16":       # bf16 VPU/EUP + MXU, f32 accumulate (v6e/v7x)
        act_dtype, mxu_dtype = jnp.bfloat16, jnp.bfloat16
    else:
        raise ValueError(f"unknown precision {precision!r}")

    pf, pb = _pack_params(params, act_dtype, mxu_dtype)

    tb = _choose_tile(n, block_rows)
    grid = pl.cdiv(n, tb)                                  # partial tail block masked

    cost = pl.CostEstimate(flops=1720 * n, transcendentals=60 * n,
                           bytes_accessed=12 * n + 4000)

    out = pl.pallas_call(
        functools.partial(_pinn_kernel, act_dtype=act_dtype),
        out_shape=jax.ShapeDtypeStruct((1, n), xT.dtype),
        grid_spec=pltpu.PrefetchScalarGridSpec(
            num_scalar_prefetch=0,
            grid=(grid,),
            in_specs=[
                pl.BlockSpec((2, tb), lambda i: (0, i)),        # x^T tile, lane-dense
                pl.BlockSpec(pf.shape, lambda i: (0, 0)),       # packed small params
                pl.BlockSpec(pb.shape, lambda i: (0, 0, 0)),    # packed 20x20 weights
            ],
            out_specs=pl.BlockSpec((1, tb), lambda i: (0, i)),  # lane-dense output
        ),
        compiler_params=pltpu.CompilerParams(
            dimension_semantics=("parallel",),
            vmem_limit_bytes=32 * 1024 * 1024),
        cost_estimate=cost,
    )(xT, pf, pb)
    return out


def pinn_forward_t(xT, params, *, block_rows=8192, precision=None):
    """Feature-major entry point: xT is (2, N); returns (1, N). No wrapper transpose."""
    if precision is None:
        precision = "bf16" if _bf16_vector_ok() else "mixed"
    return _pinn_forward_t_impl(xT, params, block_rows=block_rows, precision=precision)


def pinn_forward(x, params, *, block_rows=8192, precision=None):
    """PyTorch-layout entry point: x is (N, 2); returns (N, 1)."""
    n, in_dim = x.shape
    assert in_dim == 2
    if n == 0:
        return jnp.zeros((0, 1), x.dtype)
    out = pinn_forward_t(x.T, params, block_rows=block_rows, precision=precision)
    return out.reshape(n, 1)


# ----------------------------------------------------------------------------- params / reference
def init_params(key):
    """PyTorch nn.Linear default init: U(-1/sqrt(fan_in), 1/sqrt(fan_in)).
    Weights stored PyTorch-style: (out_features, in_features); biases (out_features,)."""
    dims = [(2, 20), (20, 20), (20, 20), (20, 1)]
    params = {}
    for idx, (fan_in, fan_out) in enumerate(dims, start=1):
        key, kw, kb = jax.random.split(key, 3)
        bound = 1.0 / jnp.sqrt(float(fan_in))
        params[f"w{idx}"] = jax.random.uniform(
            kw, (fan_out, fan_in), jnp.float32, -bound, bound)
        params[f"b{idx}"] = jax.random.uniform(
            kb, (fan_out,), jnp.float32, -bound, bound)
    return params


def pinn_reference(x, params):
    """Pure-JAX reference (identical math to the PyTorch module, all f32)."""
    h = jnp.tanh(x @ params["w1"].T + params["b1"])
    h = jnp.tanh(h @ params["w2"].T + params["b2"])
    h = jnp.tanh(h @ params["w3"].T + params["b3"])
    return h @ params["w4"].T + params["b4"]


# ----------------------------------------------------------------------------- main
if __name__ == "__main__":
    key = jax.random.PRNGKey(0)
    key, kx = jax.random.split(key)
    params = init_params(key)

    # Small batch of (x, t) collocation points; deliberately not a multiple of 128.
    N = 300
    x = jax.random.uniform(kx, (N, 2), jnp.float32, minval=-1.0, maxval=1.0)

    y_ref = pinn_reference(x, params)

    # 1) Default path: auto precision (bf16 activations on v6e/v7x, mixed on v5e).
    y = jax.block_until_ready(pinn_forward(x, params))
    assert y.shape == (N, 1), y.shape
    assert jnp.allclose(y, y_ref, atol=5e-2, rtol=5e-2), "default path mismatch"

    # 2) Full-f32 path: bit-for-bit-ish against the reference.
    y_f32 = jax.block_until_ready(pinn_forward(x, params, precision="f32"))
    assert jnp.allclose(y_f32, y_ref, atol=1e-5, rtol=1e-5), "f32 path mismatch"

    # 3) Multi-block path with masked partial tail block (300 = 2*128 + 44), f32.
    y_tiled = jax.block_until_ready(
        pinn_forward(x, params, block_rows=128, precision="f32"))
    assert jnp.allclose(y_tiled, y_ref, atol=1e-5, rtol=1e-5), "tiled path mismatch"

    # 4) Feature-major entry point (no wrapper transpose), mixed precision.
    y_fm = jax.block_until_ready(pinn_forward_t(x.T, params, precision="mixed"))
    assert y_fm.shape == (1, N)
    assert jnp.allclose(y_fm.reshape(N, 1), y_ref, atol=5e-2, rtol=5e-2), \
        "feature-major path mismatch"

    print("KERNEL_OK")
</pallas_src>

<mosaic_0001>
module attributes {stable_mosaic.version = 11 : i64} {
  func.func @_pinn_kernel(%arg0: i32, %arg1: memref<2x300xf32, #tpu.memory_space<vmem>>, %arg2: memref<20x7xbf16, #tpu.memory_space<vmem>>, %arg3: memref<2x20x20xbf16, #tpu.memory_space<vmem>>, %arg4: memref<1x300xf32, #tpu.memory_space<vmem>>) attributes {dimension_semantics = [#tpu.dimension_semantics<parallel>], iteration_bounds = array<i64: 1>, scalar_prefetch = 0 : i64, scratch_operands = 0 : i64, tpu.core_type = #tpu.core_type<tc>, window_params = [{transform_indices = @transform_0, window_bounds = array<i64: 2, 300>}, {pipeline_mode = #tpu.pipeline_mode<synchronous>, transform_indices = @transform_1, window_bounds = array<i64: 20, 7>}, {pipeline_mode = #tpu.pipeline_mode<synchronous>, transform_indices = @transform_2, window_bounds = array<i64: 2, 20, 20>}, {transform_indices = @transform_3, window_bounds = array<i64: 1, 300>}]} {
    %c0 = arith.constant 0 : index
    %c0_0 = arith.constant 0 : index
    %0 = vector.load %arg1[%c0, %c0_0] : memref<2x300xf32, #tpu.memory_space<vmem>>, vector<2x300xf32>
    %1 = arith.truncf %0 : vector<2x300xf32> to vector<2x300xbf16>
    %c0_1 = arith.constant 0 : index
    %c0_2 = arith.constant 0 : index
    %2 = vector.load %arg2[%c0_1, %c0_2] : memref<20x7xbf16, #tpu.memory_space<vmem>>, vector<20x7xbf16>
    %3 = vector.extract_strided_slice %2 {offsets = [0, 0], sizes = [20, 1], strides = [1, 1]} : vector<20x7xbf16> to vector<20x1xbf16>
    %4 = vector.extract_strided_slice %2 {offsets = [0, 1], sizes = [20, 1], strides = [1, 1]} : vector<20x7xbf16> to vector<20x1xbf16>
    %5 = vector.extract_strided_slice %2 {offsets = [0, 2], sizes = [20, 1], strides = [1, 1]} : vector<20x7xbf16> to vector<20x1xbf16>
    %6 = vector.extract_strided_slice %2 {offsets = [0, 3], sizes = [20, 1], strides = [1, 1]} : vector<20x7xbf16> to vector<20x1xbf16>
    %7 = vector.extract_strided_slice %2 {offsets = [0, 4], sizes = [20, 1], strides = [1, 1]} : vector<20x7xbf16> to vector<20x1xbf16>
    %8 = vector.extract_strided_slice %2 {offsets = [0, 5], sizes = [20, 1], strides = [1, 1]} : vector<20x7xbf16> to vector<20x1xbf16>
    %9 = vector.extract_strided_slice %2 {offsets = [0, 6], sizes = [1, 1], strides = [1, 1]} : vector<20x7xbf16> to vector<1x1xbf16>
    %10 = vector.extract_strided_slice %1 {offsets = [0, 0], sizes = [1, 300], strides = [1, 1]} : vector<2x300xbf16> to vector<1x300xbf16>
    %11 = vector.broadcast %3 : vector<20x1xbf16> to vector<20x300xbf16>
    %12 = vector.broadcast %10 : vector<1x300xbf16> to vector<20x300xbf16>
    %13 = arith.mulf %11, %12 : vector<20x300xbf16>
    %14 = vector.extract_strided_slice %1 {offsets = [1, 0], sizes = [1, 300], strides = [1, 1]} : vector<2x300xbf16> to vector<1x300xbf16>
    %15 = vector.broadcast %4 : vector<20x1xbf16> to vector<20x300xbf16>
    %16 = vector.broadcast %14 : vector<1x300xbf16> to vector<20x300xbf16>
    %17 = arith.mulf %15, %16 : vector<20x300xbf16>
    %18 = arith.addf %13, %17 : vector<20x300xbf16>
    %19 = vector.broadcast %5 : vector<20x1xbf16> to vector<20x300xbf16>
    %20 = arith.addf %18, %19 : vector<20x300xbf16>
    %21 = math.tanh %20 : vector<20x300xbf16>
    %c0_3 = arith.constant 0 : index
    %c0_4 = arith.constant 0 : index
    %c0_5 = arith.constant 0 : index
    %22 = vector.load %arg3[%c0_3, %c0_4, %c0_5] : memref<2x20x20xbf16, #tpu.memory_space<vmem>>, vector<1x20x20xbf16>
    %23 = vector.shape_cast %22 : vector<1x20x20xbf16> to vector<20x20xbf16>
    %cst = arith.constant dense<0.000000e+00> : vector<20x300xf32>
    %24 = tpu.matmul %23, %21, %cst {dimension_numbers = #tpu.dot_dimension_numbers<[1], [0], [0], [1], [0, 0, 1, 1], [], []>} : vector<20x20xbf16>, vector<20x300xbf16>, vector<20x300xf32> -> vector<20x300xf32>
    %25 = arith.truncf %24 : vector<20x300xf32> to vector<20x300xbf16>
    %26 = vector.broadcast %6 : vector<20x1xbf16> to vector<20x300xbf16>
    %27 = arith.addf %25, %26 : vector<20x300xbf16>
    %28 = math.tanh %27 : vector<20x300xbf16>
    %c1 = arith.constant 1 : index
    %c0_6 = arith.constant 0 : index
    %c0_7 = arith.constant 0 : index
    %29 = vector.load %arg3[%c1, %c0_6, %c0_7] : memref<2x20x20xbf16, #tpu.memory_space<vmem>>, vector<1x20x20xbf16>
    %30 = vector.shape_cast %29 : vector<1x20x20xbf16> to vector<20x20xbf16>
    %cst_8 = arith.constant dense<0.000000e+00> : vector<20x300xf32>
    %31 = tpu.matmul %30, %28, %cst_8 {dimension_numbers = #tpu.dot_dimension_numbers<[1], [0], [0], [1], [0, 0, 1, 1], [], []>} : vector<20x20xbf16>, vector<20x300xbf16>, vector<20x300xf32> -> vector<20x300xf32>
    %32 = arith.truncf %31 : vector<20x300xf32> to vector<20x300xbf16>
    %33 = vector.broadcast %7 : vector<20x1xbf16> to vector<20x300xbf16>
    %34 = arith.addf %32, %33 : vector<20x300xbf16>
    %35 = math.tanh %34 : vector<20x300xbf16>
    %36 = vector.broadcast %8 : vector<20x1xbf16> to vector<20x300xbf16>
    %37 = arith.mulf %36, %35 : vector<20x300xbf16>
    %38 = arith.extf %37 : vector<20x300xbf16> to vector<20x300xf32>
    %cst_9 = arith.constant dense<0.000000e+00> : vector<300xf32>
    %39 = vector.multi_reduction <add>, %38, %cst_9 [0] : vector<20x300xf32> to vector<300xf32>
    %40 = vector.shape_cast %39 : vector<300xf32> to vector<1x300xf32>
    %41 = arith.extf %9 : vector<1x1xbf16> to vector<1x1xf32>
    %42 = vector.broadcast %41 : vector<1x1xf32> to vector<1x300xf32>
    %43 = arith.addf %40, %42 : vector<1x300xf32>
    %c0_10 = arith.constant 0 : index
    %c0_11 = arith.constant 0 : index
    %44 = vector.load %arg4[%c0_10, %c0_11] : memref<1x300xf32, #tpu.memory_space<vmem>>, vector<1x300xf32>
    tpu.vector_store %arg4[%c0_10, %c0_11], %43 {strides = array<i32>} : memref<1x300xf32, #tpu.memory_space<vmem>>, vector<1x300xf32>,
    return
  }
  func.func @transform_0(%arg0: i32) -> (i32, i32) {
    %c0_i32 = arith.constant 0 : i32
    %c0_i32_0 = arith.constant 0 : i32
    return %c0_i32, %arg0 : i32, i32
  }
  func.func @transform_1(%arg0: i32) -> (i32, i32) {
    %c0_i32 = arith.constant 0 : i32
    %c0_i32_0 = arith.constant 0 : i32
    %c0_i32_1 = arith.constant 0 : i32
    return %c0_i32, %c0_i32_0 : i32, i32
  }
  func.func @transform_2(%arg0: i32) -> (i32, i32, i32) {
    %c0_i32 = arith.constant 0 : i32
    %c0_i32_0 = arith.constant 0 : i32
    %c0_i32_1 = arith.constant 0 : i32
    %c0_i32_2 = arith.constant 0 : i32
    return %c0_i32, %c0_i32_0, %c0_i32_1 : i32, i32, i32
  }
  func.func @transform_3(%arg0: i32) -> (i32, i32) {
    %c0_i32 = arith.constant 0 : i32
    %c0_i32_0 = arith.constant 0 : i32
    return %c0_i32, %arg0 : i32, i32
  }
}

</mosaic_0001>

<bundles_post_ra>
// kernel: _pinn_forward_t_impl.1
= control target key start
LH: loop header
LB: loop body
LE: loop exit
PB: predicated region body
PF: predicated region fallthrough
CT: control target
= control target key end

     0   :  { %v949_v2 = vmov 0   ;;  %s1090_s0 = inlined_call_operand.vmem [shape: f32[2,300], index: 0, kind: input, shape index: {}]   ;;  %s1091_s1 = inlined_call_operand.vmem [shape: bf16[20,7], index: 1, kind: input, shape index: {}]   ;;  %s1092_s2 = inlined_call_operand.vmem [shape: bf16[2,20,20], index: 2, kind: input, shape index: {}]   ;;  %s1093_s3 = inlined_call_operand.hbm [shape: f32[1,300], index: 3, kind: output, shape index: {}]  }
   0x1   :  { %v983_v0 = vld [vmem:[%s1091_s1 + $0x8] sm:$0x3]  ;;  %v988_v1 = vld [vmem:[%s1091_s1] sm:$0xf]  ;;  %874 = vset.pattern.permute.xlu1 %v949_v2  ;;  %872 = vset.pattern.permute.xlu0 %v949_v2  ;;  %v997_v3 = vld [vmem:[%s1091_s1 + $0x4] sm:$0xf] }
   0x2   :  { %69 = vperm.xlu0 %872, %v983_v0   ;;  %45 = vperm.xlu1 %874, %v988_v1  }
   0x3   :  { %321 = vmatprep.mubr.bf16.mxu0 %v949_v2 }
   0x4   :  { %8 = vsyncpa [#allocation3], 0  ;;  %v950_v4 = vmov 1   ;;  %v951_v5 = vmov 2   ;;  %v1010_v6 = vld [vmem:[%s1092_s2] sm:$0xff]   ;;  %vm272_vm0 = vcmask 162816   ;;  %v22_v10 = vlaneseq }
   0x5   :  { %847 = vmatprep.mubr.msk.bf16.mxu1 %vm272_vm0, %v1010_v6  ;;  %v952_v7 = vmov 3   ;;  %v953_v8 = vmov 1983009808   ;;  %v16_v14 = vld [vmem:[%s1090_s0] sm:$0x3f]  ;;  %vm279_vm1 = vcmask 1041408  }
   0x6   :  { %873 = vset.pattern.permute.xlu0 %v950_v4  ;;  %57 = vperm.xlu1 %874, %v997_v3   ;;  %v20_v9 = vunpack.c.l.s4 %v953_v8  ;;  %v1018_v12 = vshrl.u32 %v22_v10, 7  ;;  %v18_v16 = vcombine.high %v16_v14, %v16_v14  ;;  %v954_v21 = vmov 839922192  }
   0x7   :  { %139 = vperm.xlu0 %873, %v983_v0   ;;  %v49_v22 = vunpack.c.l.s4 %v954_v21  ;;  %vm730_vm2 = vcmask 359424   ;;  %vm734_vm3 = vcmask 355328   ;;  %vm712_vm4 = vcmask 1043456  }
   0x8   :  { %v21_v11 = vunpack.c.0.s8 %v20_v9  ;;  %v84_v31 = vsub.s32 0, %v1018_v12  ;;  %vm781_vm5 = vcmp.lt.s32.totalorder %v22_v10, 300 }
   0x9   :  { %v50_v27 = vunpack.c.0.s8 %v49_v22 }
   0xa   :  { %875 = vset.pattern.permute.xlu1 %v950_v4  ;;  %v24_v13 = vsub.s32 %v21_v11, %v1018_v12 }
   0xb   :  { %128 = vperm.xlu0 %873, %v997_v3   ;;  %117 = vperm.xlu1 %875, %v988_v1   ;;  %v1026_v39 = vsub.s32 %v50_v27, %v1018_v12 }
   0xc   :  { %v25_v15 = vrot.slane %v16_v14, %v24_v13  ;;  %v32_v18 = vrot.slane %v18_v16, %v24_v13 }
   0xe   :  { %v33_v17 = vcombine.high %v25_v15, %v25_v15  ;;  %v37_v19 = vpack.c.bf16 %v25_v15, %v25_v15  ;;  %v39_v23 = vpack.c.bf16 %v32_v18, %v32_v18 }
   0xf   :  { %877 = vset.pattern.permute.xlu0 %v951_v5  ;;  %876 = vset.pattern.permute.xlu1 %v951_v5 }
  0x10   :  { %193 = vperm.xlu0 %877, %v988_v1   ;;  %215 = vperm.xlu1 %876, %v983_v0   ;;  %v38_v20 = vpack.c.bf16 %v33_v17, %v33_v17  ;;  %v149_v24 = vshrl.u32 %v37_v19, 16  ;;  %v163_v26 = vshrl.u32 %v39_v23, 16  ;;  %v80_v30 = vpack.i.b16 %v37_v19, %v37_v19 }
  0x11   :  { %v94_v33 = vpack.i.b16 %v39_v23, %v39_v23 }
  0x12   :  { %v156_v25 = vshrl.u32 %v38_v20, 16  ;;  %v150_v28 = vpack.i.b16 %v149_v24, %v149_v24  ;;  %v87_v32 = vpack.i.b16 %v38_v20, %v38_v20  ;;  %v164_v36 = vpack.i.b16 %v163_v26, %v163_v26 }
  0x13   :  { %v85_v40 = vrot.slane %v80_v30, %v84_v31  ;;  %v99_v42 = vrot.slane %v94_v33, %v84_v31 }
  0x14   :  { %204 = vperm.xlu1 %876, %v997_v3   ;;  %879 = vset.pattern.permute.xlu0 %v952_v7  ;;  %v157_v29 = vpack.i.b16 %v156_v25, %v156_v25  ;;  %v155_v37 = vrot.slane %v150_v28, %v84_v31  ;;  %v92_v41 = vrot.slane %v87_v32, %v84_v31 }
  0x15   :  { %395 = vperm.xlu0 %879, %v988_v1   ;;  %v169_v44 = vrot.slane %v164_v36, %v84_v31  ;;  %v799_v51 = vcombine.low %v99_v42, %v99_v42 }
  0x16   :  { %v162_v38 = vrot.slane %v157_v29, %v84_v31  ;;  %v798_v50 = vcombine.low %v85_v40, %v92_v41 }
  0x17   :  { %v801_v52 = vcombine.low %v169_v44, %v169_v44 }
  0x18   :  { %878 = vset.pattern.permute.xlu1 %v952_v7  ;;  %v800_v48 = vcombine.low %v155_v37, %v162_v38 }
  0x19   :  { %417 = vperm.xlu1 %878, %v983_v0  }
  0x1d   :  { %406 = vperm.xlu1 %878, %v997_v3  }
  0x7d   :  { %v46_v34 = vpop.permute.xlu1 %45  ;;  %v70_v35 = vpop.permute.xlu0 %69 }
  0x7e   :  { %v78_v46 = vrot.slane %v70_v35, %v1026_v39  ;;  %v54_v49 = vrot.slane %v46_v34, %v1026_v39 }
  0x80   :  { %v114_v55 = vmul.bf16 %v798_v50, %v78_v46  ;;  %v110_v58 = vmul.bf16 %v798_v50, %v54_v49  ;;  %v111_v59 = vmul.bf16 %v799_v51, %v54_v49  ;;  %v115_v60 = vmul.bf16 %v799_v51, %v78_v46  ;;  %v888_v46 = vld [vmem:[%s1092_s2 + $0x8] ss:$0 sps:$4 sm:$0x33]  }
  0x81   :  { %v58_v43 = vpop.permute.xlu1 %57  ;;  %v957_v49 = vmov 6  }
  0x82   :  { %v140_v45 = vpop.permute.xlu0 %139  ;;  %v66_v62 = vrot.slane %v58_v43, %v1026_v39 }
  0x83   :  { %v148_v47 = vrot.slane %v140_v45, %v1026_v39 }
  0x84   :  { %v112_v18 = vmul.bf16 %v798_v50, %v66_v62  ;;  %v113_v20 = vmul.bf16 %v799_v51, %v66_v62  ;;  %v743_v50 = vunpack.c.l.bf16 %v988_v1 }
  0x85   :  { %v184_v56 = vmul.bf16 %v800_v48, %v148_v47  ;;  %v185_v63 = vmul.bf16 %v801_v52, %v148_v47  ;;  %v1053_v47 = vld [vmem:[%s1092_s2 + $0xc] sm:$0xff]  }
  0x86   :  { %v129_v53 = vpop.permute.xlu0 %128  ;;  %v118_v54 = vpop.permute.xlu1 %117 }
  0x87   :  { %v126_v57 = vrot.slane %v118_v54, %v1026_v39  ;;  %v137_v61 = vrot.slane %v129_v53, %v1026_v39  ;;  %v190_v13 = vadd.bf16 %v184_v56, %v114_v55  ;;  %v191_v19 = vadd.bf16 %v185_v63, %v115_v60 }
  0x89   :  { %v180_v4 = vmul.bf16 %v800_v48, %v126_v57  ;;  %v181_v5 = vmul.bf16 %v801_v52, %v126_v57  ;;  %v182_v14 = vmul.bf16 %v800_v48, %v137_v61  ;;  %v183_v15 = vmul.bf16 %v801_v52, %v137_v61 }
  0x8a   :  { %v955_v48 = vmov 4  }
  0x8b   :  { %v194_v7 = vpop.permute.xlu0 %193  ;;  %v186_v8 = vadd.bf16 %v180_v4, %v110_v58  ;;  %v187_v9 = vadd.bf16 %v181_v5, %v111_v59  ;;  %v216_v11 = vpop.permute.xlu1 %215  ;;  %v188_v26 = vadd.bf16 %v182_v14, %v112_v18  ;;  %v189_v27 = vadd.bf16 %v183_v15, %v113_v20  ;;  %880 = vset.pattern.permute.xlu1 %v955_v48 }
  0x8c   :  { %v202_v16 = vrot.slane %v194_v7, %v1026_v39  ;;  %v224_v17 = vrot.slane %v216_v11, %v1026_v39  ;;  %881 = vset.pattern.permute.xlu0 %v955_v48  ;;  %582 = vperm.xlu1 %880, %v988_v1  }
  0x8d   :  { %593 = vperm.xlu0 %881, %v997_v3  }
  0x8e   :  { %v225_v21 = vadd.bf16 %v202_v16, %v186_v8  ;;  %v226_v22 = vadd.bf16 %v202_v16, %v187_v9  ;;  %v229_v23 = vadd.bf16 %v224_v17, %v190_v13  ;;  %v230_v24 = vadd.bf16 %v224_v17, %v191_v19 }
  0x8f   :  { %v205_v25 = vpop.permute.xlu1 %204 }
  0x90   :  { %891 = vtanh.bf16 %v225_v21  ;;  %v213_v28 = vrot.slane %v205_v25, %v1026_v39  ;;  %604 = vperm.xlu1 %880, %v983_v0   ;;  %v396_v55 = vpop.permute.xlu0 %395 }
  0x91   :  { %893 = vtanh.bf16 %v226_v22  ;;  %v404_v61 = vrot.slane %v396_v55, %v1026_v39 }
  0x92   :  { %895 = vtanh.bf16 %v229_v23  ;;  %v227_v29 = vadd.bf16 %v213_v28, %v188_v26  ;;  %v228_v30 = vadd.bf16 %v213_v28, %v189_v27  ;;  %v890_v27 = vld [vmem:[%s1092_s2 + $0x14] ss:$0 sps:$4 sm:$0x33]   ;;  %s959_s2 = smov [#allocation2]  }
  0x93   :  { %897 = vtanh.bf16 %v230_v24  ;;  %s790_s26 = sshll.u32 %s959_s2, 4  ;;  %s791_s26 = int_to_ptr.vmem [resolvable:$true] %s790_s26 }
  0x94   :  { %899 = vtanh.bf16 %v227_v29  ;;  %v418_v51 = vpop.permute.xlu1 %417  ;;  %s927_s27 = scalar_lea.vmem %s791_s26, 48  ;;  %s931_s28 = scalar_lea.vmem %s791_s26, 64 }
  0x95   :  { %901 = vtanh.bf16 %v228_v30  ;;  %v426_v52 = vrot.slane %v418_v51, %v1026_v39  ;;  %p928_p0 = scmp.ne.s32.totalorder %s791_s26, %s927_s27  ;;  %p932_p1 = scmp.lt.s32.totalorder %s791_s26, %s791_s26 }
  0x96   :  { %p933_p2 = scmp.lt.s32.totalorder %s931_s28, %s927_s27 }
  0x97   :  { %v816_v53 = vcombine.low %v426_v52, %v426_v52 }
  0x98   :  { %v407_v57 = vpop.permute.xlu1 %406  ;;  %p934_p3 = por %p933_p2, %p932_p1 }
  0x9a   :  { %p935_p4 = pnand %p934_p3, %p928_p0 }
  0x9e   :  { %v892_v31 = vpop.eup %891 }
  0x9f   :  { %v894_v32 = vpop.eup %893 }
  0xa0   :  { %v896_v33 = vpop.eup %895 }
  0xa1   :  { %v898_v34 = vpop.eup %897  ;;  %v808_v35 = vcombine.high %v896_v33, %v896_v33  ;;  %v807_v36 = vcombine.low %v896_v33, %v896_v33 }
  0xa2   :  { %v900_v37 = vpop.eup %899  ;;  %v809_v38 = vcombine.low %v898_v34, %v898_v34 }
  0xa3   :  { %v902_v40 = vpop.eup %901  ;;  %810 = vmatprep.subr.msk.bf16.mxu0 %vm279_vm1, %v808_v35  ;;  %v281_v41 = vsel %vm279_vm1, %v807_v36, 0  ;;  %v805_v42 = vcombine.high %v892_v31, %v900_v37  ;;  %v804_v45 = vcombine.low %v892_v31, %v900_v37 }
  0xa4   :  { %859 = vmatprep.subr.msk.bf16.mxu1 %vm279_vm1, %v809_v38  ;;  %302 = vmatpush1.bf16.msra.mxu0 %v281_v41  ;;  %v287_v43 = vsel %vm279_vm1, %v809_v38, 0  ;;  %v806_v44 = vcombine.low %v894_v32, %v902_v40 }
  0xa5   :  { %844 = vmatpush3.bf16.msra.mxu1 %v287_v43  ;;  %303 = vmatprep.subr.bf16.mxu0 %v805_v42 }
  0xa6   :  { %845 = vmatprep.subr.bf16.mxu1 %v806_v44 }
  0xa8   :  { %304 = vmatpush1.bf16.msra.mxu0 %v804_v45 }
  0xa9   :  { %846 = vmatpush3.bf16.msra.mxu1 %v806_v44 }
  0xab   :  { %811 = vmatmul.mubr.msk.bf16.vlgmr.msra.gmra.mxu0 %vm272_vm0, %v1010_v6  ;;  %v956_v6 = vmov 5  }
  0xac   :  { %848 = vmatmul.mubr.msk.bf16.vlgmr.msra.gmra.mxu1 %vm272_vm0, %v888_v46  ;;  %331 = vmatprep.mubr.bf16.mxu0 %v949_v2 }
  0xad   :  { %508 = vmatprep.mubr.bf16.mxu1 %v949_v2  ;;  %883 = vset.pattern.permute.xlu0 %v956_v6 }
  0xae   :  { %648 = vperm.xlu0 %883, %v997_v3   ;;  %882 = vset.pattern.permute.xlu1 %v956_v6 }
  0xaf   :  { %637 = vperm.xlu1 %882, %v988_v1  }
  0xb2   :  { %885 = vset.pattern.permute.xlu0 %v957_v49 }
  0xb3   :  { %812 = vmatmul.mubr.msk.bf16.gmra.mxu0 %vm272_vm0, %v888_v46  ;;  %659 = vperm.xlu1 %882, %v983_v0   ;;  %v415_v0 = vrot.slane %v407_v57, %v1026_v39 }
  0xb4   :  { %855 = vmatprep.mubr.msk.bf16.mxu0 %vm272_vm0, %v1053_v47 }
  0xb5   :  { %v815_v5 = vcombine.low %v404_v61, %v415_v0 }
  0xb7   :  { %884 = vset.pattern.permute.xlu1 %v957_v49 }
  0xb8   :  { %746 = vperm.xlu1 %884, %v743_v50  }
 0x107   :  { %v583_v32 = vpop.permute.xlu1 %582 }
 0x108   :  { %v594_v35 = vpop.permute.xlu0 %593  ;;  %v591_v40 = vrot.slane %v583_v32, %v1026_v39 }
 0x109   :  { %v602_v41 = vrot.slane %v594_v35, %v1026_v39 }
 0x10b   :  { %v605_v33 = vpop.permute.xlu1 %604  ;;  %v827_v45 = vcombine.low %v591_v40, %v602_v41 }
 0x10c   :  { %v613_v34 = vrot.slane %v605_v33, %v1026_v39 }
 0x10e   :  { %v828_v36 = vcombine.low %v613_v34, %v613_v34 }
 0x12a   :  { %v638_v50 = vpop.permute.xlu1 %637 }
 0x16b   :  { %v323_v54 = vpop.f32.mrf.mxu0 }
 0x16c   :  { %v849_v56 = vpop.f32.mrf.mxu1 }
 0x16d   :  { %v393_v3 = vpack.c.bf16 %v849_v56, %v849_v56  ;;  %v325_v58 = vpop.f32.mrf.mxu0 }
 0x16e   :  { %v374_v59 = vpop.f32.mrf.mxu1 }
 0x16f   :  { %v442_v60 = vadd.bf16 %v816_v53, %v393_v3  ;;  %v327_v62 = vpop.f32.mrf.mxu0 }
 0x170   :  { %v850_v1 = vpop.f32.mrf.mxu1  ;;  %v388_v17 = vpack.c.bf16 %v327_v62, %v323_v54 }
 0x171   :  { %903 = vtanh.bf16 %v442_v60  ;;  %v329_v63 = vpop.f32.mrf.mxu0 }
 0x172   :  { %v377_v4 = vpop.f32.mrf.mxu1  ;;  %v389_v9 = vpack.c.bf16 %v329_v63, %v325_v58  ;;  %v437_v22 = vadd.bf16 %v815_v5, %v388_v17  ;;  %v660_v58 = vpop.permute.xlu1 %659 }
 0x173   :  { %v390_v7 = vpack.c.bf16 %v377_v4, %v374_v59  ;;  %v333_v8 = vpop.f32.mrf.mxu0  ;;  %v668_v1 = vrot.slane %v660_v58, %v1026_v39 }
 0x174   :  { %v391_v11 = vpack.c.bf16 %v333_v8, %v333_v8  ;;  %v438_v19 = vadd.bf16 %v815_v5, %v389_v9 }
 0x175   :  { %v439_v13 = vadd.bf16 %v815_v5, %v390_v7  ;;  %v335_v14 = vpop.f32.mrf.mxu0  ;;  %v649_v5 = vpop.permute.xlu0 %648  ;;  %v646_v7 = vrot.slane %v638_v50, %v1026_v39 }
 0x176   :  { %v440_v15 = vadd.bf16 %v816_v53, %v391_v11  ;;  %v392_v16 = vpack.c.bf16 %v335_v14, %v335_v14  ;;  %v657_v8 = vrot.slane %v649_v5, %v1026_v39 }
 0x177   :  { %905 = vtanh.bf16 %v439_v13  ;;  %v337_v18 = vpop.f32.mrf.mxu0 }
 0x178   :  { %907 = vtanh.bf16 %v440_v15  ;;  %v441_v20 = vadd.bf16 %v816_v53, %v392_v16 }
 0x179   :  { %v338_v21 = vpop.f32.mrf.mxu0 }
 0x17a   :  { %909 = vtanh.bf16 %v441_v20 }
 0x17b   :  { %911 = vtanh.bf16 %v438_v19 }
 0x17c   :  { %913 = vtanh.bf16 %v437_v22 }
 0x17f   :  { %v904_v23 = vpop.eup %903 }
 0x180   :  { %860 = vmatprep.subr.msk.bf16.mxu0 %vm279_vm1, %v904_v23  ;;  %v474_v24 = vsel %vm279_vm1, %v904_v23, 0 }
 0x181   :  { %852 = vmatpush3.bf16.msra.mxu0 %v474_v24 }
 0x185   :  { %v906_v25 = vpop.eup %905 }
 0x186   :  { %v908_v26 = vpop.eup %907  ;;  %853 = vmatprep.subr.bf16.mxu0 %v906_v25 }
 0x187   :  { %854 = vmatpush3.bf16.msra.mxu0 %v906_v25  ;;  %v468_v29 = vsel %vm279_vm1, %v908_v26, 0 }
 0x188   :  { %v910_v28 = vpop.eup %909 }
 0x189   :  { %822 = vmatprep.subr.msk.bf16.mxu1 %vm279_vm1, %v910_v28  ;;  %v912_v30 = vpop.eup %911 }
 0x18a   :  { %856 = vmatmul.mubr.msk.bf16.vlgmr.msra.gmra.mxu0 %vm272_vm0, %v890_v27  ;;  %489 = vmatpush1.bf16.msra.mxu1 %v468_v29  ;;  %v914_v31 = vpop.eup %913 }
 0x18b   :  { %490 = vmatprep.subr.bf16.mxu1 %v912_v30 }
 0x18e   :  { %491 = vmatpush1.bf16.msra.mxu1 %v914_v31 }
 0x191   :  { %823 = vmatmul.mubr.msk.bf16.vlgmr.msra.gmra.mxu1 %vm272_vm0, %v1053_v47 }
 0x192   :  { %518 = vmatprep.mubr.bf16.mxu1 %v949_v2 }
 0x199   :  { %824 = vmatmul.mubr.msk.bf16.gmra.mxu1 %vm272_vm0, %v890_v27 }
 0x24a   :  { %v857_v37 = vpop.f32.mrf.mxu0 }
 0x24b   :  { %v580_v38 = vpack.c.bf16 %v857_v37, %v857_v37 }
 0x24c   :  { %v561_v42 = vpop.f32.mrf.mxu0 }
 0x24d   :  { %v629_v43 = vadd.bf16 %v828_v36, %v580_v38 }
 0x24e   :  { %v858_v44 = vpop.f32.mrf.mxu0 }
 0x24f   :  { %915 = vtanh.bf16 %v629_v43 }
 0x250   :  { %v564_v2 = vpop.f32.mrf.mxu0 }
 0x251   :  { %v577_v46 = vpack.c.bf16 %v564_v2, %v561_v42  ;;  %v510_v47 = vpop.f32.mrf.mxu1 }
 0x253   :  { %v626_v48 = vadd.bf16 %v827_v45, %v577_v46  ;;  %v512_v6 = vpop.f32.mrf.mxu1 }
 0x255   :  { %917 = vtanh.bf16 %v626_v48  ;;  %v514_v49 = vpop.f32.mrf.mxu1 }
 0x256   :  { %v575_v51 = vpack.c.bf16 %v514_v49, %v510_v47 }
 0x257   :  { %v516_v52 = vpop.f32.mrf.mxu1 }
 0x258   :  { %v624_v53 = vadd.bf16 %v827_v45, %v575_v51  ;;  %v576_v54 = vpack.c.bf16 %v516_v52, %v512_v6 }
 0x259   :  { %v520_v55 = vpop.f32.mrf.mxu1 }
 0x25a   :  { %v625_v56 = vadd.bf16 %v827_v45, %v576_v54  ;;  %v578_v57 = vpack.c.bf16 %v520_v55, %v520_v55  ;;  %919 = vtanh.bf16 %v624_v53  ;;  %v958_v53 = vmov 1966171168  }
 0x25b   :  { %v522_v3 = vpop.f32.mrf.mxu1  ;;  %v757_v54 = vunpack.c.l.s4 %v958_v53 }
 0x25c   :  { %921 = vtanh.bf16 %v625_v56  ;;  %v579_v59 = vpack.c.bf16 %v522_v3, %v522_v3  ;;  %v627_v61 = vadd.bf16 %v828_v36, %v578_v57 }
 0x25d   :  { %v916_v60 = vpop.eup %915  ;;  %v524_v0 = vpop.f32.mrf.mxu1 }
 0x25e   :  { %v628_v62 = vadd.bf16 %v828_v36, %v579_v59  ;;  %v834_v63 = vcombine.low %v916_v60, %v916_v60  ;;  %v758_v59 = vunpack.c.0.s8 %v757_v54 }
 0x25f   :  { %v525_v4 = vpop.f32.mrf.mxu1 }
 0x260   :  { %923 = vtanh.bf16 %v628_v62  ;;  %v701_v9 = vmul.bf16 %v834_v63, %v668_v1  ;;  %v747_v62 = vpop.permute.xlu1 %746 }
 0x261   :  { %925 = vtanh.bf16 %v627_v61 }
 0x262   :  { %v710_v17 = vunpack.c.l.bf16 %v701_v9 }
 0x263   :  { %v918_v11 = vpop.eup %917 }
 0x264   :  { %v830_v13 = vcombine.low %v918_v11, %v918_v11  ;;  %v832_v14 = vcombine.high %v918_v11, %v918_v11  ;;  %v735_v24 = vsel %vm734_vm3, %v710_v17, 0.0 }
 0x266   :  { %v697_v15 = vmul.bf16 %v830_v13, %v646_v7  ;;  %v699_v16 = vmul.bf16 %v832_v14, %v657_v8 }
 0x268   :  { %v704_v18 = vunpack.c.l.bf16 %v697_v15  ;;  %v707_v19 = vunpack.c.l.bf16 %v699_v16  ;;  %v920_v20 = vpop.eup %919 }
 0x26a   :  { %v922_v21 = vpop.eup %921  ;;  %v731_v22 = vsel %vm730_vm2, %v704_v18, 0.0  ;;  %v732_v23 = vsel %vm730_vm2, %v707_v19, 0.0 }
 0x26b   :  { %v829_v25 = vcombine.low %v920_v20, %v922_v21  ;;  %v831_v26 = vcombine.high %v920_v20, %v922_v21  ;;  %v733_v27 = vadd.f32 %v732_v23, %v731_v22 }
 0x26d   :  { %v696_v39 = vmul.bf16 %v829_v25, %v646_v7  ;;  %v698_v28 = vmul.bf16 %v831_v26, %v657_v8  ;;  %v736_v29 = vadd.f32 %v735_v24, %v733_v27  ;;  %v761_v8 = vsub.s32 %v758_v59, %v1018_v12 }
 0x26e   :  { %v924_v30 = vpop.eup %923 }
 0x26f   :  { %v926_v31 = vpop.eup %925  ;;  %v737_v33 = vrot.slane %v736_v29, 4  ;;  %v702_v34 = vunpack.c.l.bf16 %v696_v39  ;;  %v703_v35 = vunpack.c.h.bf16 %v696_v39  ;;  %v705_v36 = vunpack.c.l.bf16 %v698_v28 }
 0x270   :  { %v833_v32 = vcombine.low %v926_v31, %v924_v30  ;;  %v706_v37 = vunpack.c.h.bf16 %v698_v28 }
 0x271   :  { %v738_v40 = vadd.f32 %v737_v33, %v736_v29  ;;  %v711_v43 = vadd.f32 %v705_v36, %v702_v34 }
 0x272   :  { %v700_v38 = vmul.bf16 %v833_v32, %v668_v1  ;;  %v721_v44 = vadd.f32 %v706_v37, %v703_v35 }
 0x273   :  { %v739_v45 = vrot.slane %v738_v40, 2 }
 0x274   :  { %v708_v41 = vunpack.c.l.bf16 %v700_v38  ;;  %v709_v42 = vunpack.c.h.bf16 %v700_v38 }
 0x275   :  { %v740_v50 = vadd.f32 %v739_v45, %v738_v40 }
 0x276   :  { %v713_v2 = vsel %vm712_vm4, %v708_v41, 0.0  ;;  %v722_v46 = vsel %vm712_vm4, %v709_v42, 0.0 }
 0x277   :  { %v714_v47 = vadd.f32 %v713_v2, %v711_v43  ;;  %v723_v48 = vadd.f32 %v722_v46, %v721_v44  ;;  %v741_v57 = vrot.slane %v740_v50, 1 }
 0x279   :  { %v715_v6 = vrot.slane %v714_v47, 4  ;;  %v724_v49 = vrot.slane %v723_v48, 4  ;;  %v742_v0 = vadd.f32 %v741_v57, %v740_v50 }
 0x27b   :  { %v716_v51 = vadd.f32 %v715_v6, %v714_v47  ;;  %v725_v52 = vadd.f32 %v724_v49, %v723_v48  ;;  %v751_v7 = vadd.f32 %v747_v62, %v742_v0 }
 0x27d   :  { %v717_v55 = vrot.slane %v716_v51, 2  ;;  %v726_v56 = vrot.slane %v725_v52, 2  ;;  %v769_v13 = vrot.slane %v751_v7, %v761_v8 }
 0x27f   :  { %v718_v3 = vadd.f32 %v717_v55, %v716_v51  ;;  %v727_v58 = vadd.f32 %v726_v56, %v725_v52 }
 0x281   :  { %v719_v60 = vrot.slane %v718_v3, 1  ;;  %v728_v61 = vrot.slane %v727_v58, 1 }
 0x283   :  { %v720_v1 = vadd.f32 %v719_v60, %v718_v3  ;;  %v729_v63 = vadd.f32 %v728_v61, %v727_v58 }
 0x285   :  { %v749_v4 = vadd.f32 %v747_v62, %v720_v1  ;;  %v750_v5 = vadd.f32 %v747_v62, %v729_v63 }
 0x287   :  { %v755_v9 = vcombine.low %v749_v4, %v750_v5 }
 0x289   :  { %v762_v11 = vrot.slane %v755_v9, %v761_v8 }
 0x28b   :  { %v770_v14 = vcombine.low %v762_v11, %v769_v13 }
 0x28d   :  { %v777_v15 = vrot.slane %v770_v14, %v761_v8 }
 0x28f   :  { %783 = vst.msk [vmem:[#allocation2] sm:$0x7] %vm781_vm5, %v777_v15 }
 0x290   :  { %938 = shalt.err (!%p935_p4)
}
 0x291   :  { %793 = dma.vmem_to_hbm [thread:$0]  %s791_s26, 48, %s1093_s3, [#allocation3]  }
 0x292   :  { %947 = dma.done.wait [#allocation3], 48  }
 0x293   :  { %948 = vsyncadd [#allocation3], 4294967248 }
 0x294   :  { %797 = vsyncpa [#allocation3], 1 }

</bundles_post_ra>
